<compile_context>
chip_gen: v6e
topology: v6e:2x2x1
jax: 0.10.0
libtpu: 0.0.40
codegen_flags: <defaults>
</compile_context>

<pallas_src>
import functools

import numpy as np
import jax
import jax.numpy as jnp
from jax.experimental import pallas as pl
from jax.experimental.pallas import tpu as pltpu


def _csce_kernel(x_ref, tgt_ref, w_ref, out_ref, acc_ref, *, n_rows, block_rows):
    i = pl.program_id(0)

    @pl.when(i == 0)
    def _init():
        acc_ref[0] = jnp.float32(0.0)   # weighted NLL sum (numerator)
        acc_ref[1] = jnp.float32(0.0)   # weight sum       (denominator)

    x = x_ref[...].astype(jnp.float32)       # (TM, C)
    tgt = tgt_ref[...]                       # (TM, 1) int32
    w = w_ref[...]                           # (1,  C) float32

    tm, c = x.shape

    # rows past the true batch size (partial last tile) contribute nothing
    row = jax.lax.broadcasted_iota(jnp.int32, (tm, 1), 0) + i * block_rows
    valid = row < n_rows                     # (TM, 1)

    # numerically stable log-sum-exp along the class (lane) axis
    m = jnp.max(x, axis=-1, keepdims=True)
    lse = jnp.log(jnp.sum(jnp.exp(x - m), axis=-1, keepdims=True)) + m   # (TM, 1)

    # gather-free pick of target logit and per-sample weight (one masked pass)
    col = jax.lax.broadcasted_iota(jnp.int32, (tm, c), 1)
    hit = col == tgt                         # (TM, C) bool
    picked_x = jnp.sum(jnp.where(hit, x, 0.0), axis=-1, keepdims=True)   # (TM, 1)
    w_i = jnp.sum(jnp.where(hit, w, 0.0), axis=-1, keepdims=True)        # (TM, 1)

    num_i = jnp.where(valid, w_i * (lse - picked_x), 0.0)
    den_i = jnp.where(valid, w_i, 0.0)

    acc_ref[0] += jnp.sum(num_i)
    acc_ref[1] += jnp.sum(den_i)

    @pl.when(i == pl.num_programs(0) - 1)
    def _finalize():
        out_ref[0, 0] = acc_ref[0] / acc_ref[1]


def csce_loss(x, target, weight, *, block_rows=None, target_block_bytes=4 << 20):
    """Pallas implementation of F.cross_entropy(x, target, weight=weight)."""
    n, c = x.shape
    itemsize = jnp.dtype(x.dtype).itemsize

    if block_rows is None:
        block_rows = target_block_bytes // max(1, c * itemsize)
        block_rows = max(8, min(8192, block_rows))
        block_rows = (block_rows // 8) * 8
    if n <= block_rows:
        tm = n          # single block == full array dims (any N is legal)
    else:
        tm = block_rows  # multiple of 8; partial last tile masked in-kernel
    grid_n = pl.cdiv(n, tm)

    tgt2 = target.astype(jnp.int32).reshape(n, 1)
    w2 = weight.astype(jnp.float32).reshape(1, c)

    kernel = functools.partial(_csce_kernel, n_rows=n, block_rows=tm)

    block_bytes = tm * c * itemsize
    # x double-buffered + small tgt/weight blocks + headroom; safe on v7x too.
    vmem_limit = int(min(60 << 20, max(16 << 20, 2 * block_bytes + (2 << 20))))

    out = pl.pallas_call(
        kernel,
        out_shape=jax.ShapeDtypeStruct((1, 1), jnp.float32),
        grid=(grid_n,),
        in_specs=[
            pl.BlockSpec((tm, c), lambda i: (i, 0)),   # logits row tile
            pl.BlockSpec((tm, 1), lambda i: (i, 0)),   # targets row tile
            pl.BlockSpec((1, c), lambda i: (0, 0)),    # class weights (resident)
        ],
        out_specs=pl.BlockSpec(memory_space=pltpu.SMEM),
        scratch_shapes=[pltpu.SMEM((2,), jnp.float32)],
        compiler_params=pltpu.CompilerParams(
            dimension_semantics=("arbitrary",),
            vmem_limit_bytes=vmem_limit,
        ),
    )(x, tgt2, w2)
    return out[0, 0]


def make_csce_weight(num_class_list, beta):
    """Replicates CSCE.update_weight (class-balanced effective-number weights)."""
    num_class_list = np.asarray(num_class_list, dtype=np.float64)
    effective_num = 1.0 - np.power(beta, num_class_list)
    per_cls_weights = (1.0 - beta) / effective_num
    per_cls_weights = per_cls_weights / np.sum(per_cls_weights) * len(num_class_list)
    return jnp.asarray(per_cls_weights, dtype=jnp.float32)


def _ref_loss(x, target, weight):
    logp = jax.nn.log_softmax(x.astype(jnp.float32), axis=-1)
    picked = logp[jnp.arange(x.shape[0]), target]
    w_i = weight[target]
    return -jnp.sum(w_i * picked) / jnp.sum(w_i)


if __name__ == "__main__":
    key = jax.random.PRNGKey(0)
    k1, k2, k3, k4 = jax.random.split(key, 4)

    # deterministic "module init": per-class sample counts + drw schedule beta
    num_class_list = [50, 20, 10, 5]
    beta = 0.999999  # CSCE.betas[1] for the 'drw' scheduler after the DRW epoch
    weight = make_csce_weight(num_class_list, beta)

    # small case matching the module forward: (N, C) logits, (N,) int targets
    N, C = 8, 4
    x = jax.random.normal(k1, (N, C), dtype=jnp.float32)
    target = jax.random.randint(k2, (N,), 0, C, dtype=jnp.int32)

    loss = csce_loss(x, target, weight)
    jax.block_until_ready(loss)
    ref = _ref_loss(x, target, weight)
    assert jnp.allclose(loss, ref, rtol=1e-5, atol=1e-5), (loss, ref)

    # exercise the multi-tile path with a masked partial last tile (grid of 3)
    N2 = 20
    x2 = jax.random.normal(k3, (N2, C), dtype=jnp.float32)
    t2 = jax.random.randint(k4, (N2,), 0, C, dtype=jnp.int32)
    loss2 = csce_loss(x2, t2, weight, block_rows=8)
    jax.block_until_ready(loss2)
    ref2 = _ref_loss(x2, t2, weight)
    assert jnp.allclose(loss2, ref2, rtol=1e-5, atol=1e-5), (loss2, ref2)

    print("KERNEL_OK")
</pallas_src>

<mosaic_0001>
module attributes {stable_mosaic.version = 11 : i64} {
  func.func @_csce_kernel(%arg0: i32, %arg1: memref<8x4xf32, #tpu.memory_space<vmem>>, %arg2: memref<8x1xi32, #tpu.memory_space<vmem>>, %arg3: memref<1x4xf32, #tpu.memory_space<vmem>>, %arg4: memref<1x1xf32, #tpu.memory_space<smem>>, %arg5: memref<2xf32, #tpu.memory_space<smem>>) attributes {dimension_semantics = [#tpu.dimension_semantics<arbitrary>], iteration_bounds = array<i64: 1>, scalar_prefetch = 0 : i64, scratch_operands = 1 : i64, tpu.core_type = #tpu.core_type<tc>, window_params = [{transform_indices = @transform_0, window_bounds = array<i64: 8, 4>}, {transform_indices = @transform_1, window_bounds = array<i64: 8, 1>}, {pipeline_mode = #tpu.pipeline_mode<synchronous>, transform_indices = @transform_2, window_bounds = array<i64: 1, 4>}, {transform_indices = @transform_3, window_bounds = array<i64: 1, 1>}]} {
    %c0_i32 = arith.constant 0 : i32
    %0 = arith.cmpi eq, %arg0, %c0_i32 : i32
    %1 = arith.extui %0 : i1 to i32
    %c0_i32_0 = arith.constant 0 : i32
    %2 = arith.cmpi ne, %1, %c0_i32_0 : i32
    scf.if %2 {
      %cst_21 = arith.constant 0.000000e+00 : f32
      %c0_22 = arith.constant 0 : index
      %57 = memref.load %arg5[%c0_22] : memref<2xf32, #tpu.memory_space<smem>>
      memref.store %cst_21, %arg5[%c0_22] : memref<2xf32, #tpu.memory_space<smem>>
      %cst_23 = arith.constant 0.000000e+00 : f32
      %c1_24 = arith.constant 1 : index
      %58 = memref.load %arg5[%c1_24] : memref<2xf32, #tpu.memory_space<smem>>
      memref.store %cst_23, %arg5[%c1_24] : memref<2xf32, #tpu.memory_space<smem>>
    } else {
    }
    %c0 = arith.constant 0 : index
    %c0_1 = arith.constant 0 : index
    %3 = vector.load %arg1[%c0, %c0_1] : memref<8x4xf32, #tpu.memory_space<vmem>>, vector<8x4xf32>
    %c0_2 = arith.constant 0 : index
    %c0_3 = arith.constant 0 : index
    %4 = vector.load %arg2[%c0_2, %c0_3] : memref<8x1xi32, #tpu.memory_space<vmem>>, vector<8x1xi32>
    %c0_4 = arith.constant 0 : index
    %c0_5 = arith.constant 0 : index
    %5 = vector.load %arg3[%c0_4, %c0_5] : memref<1x4xf32, #tpu.memory_space<vmem>>, vector<1x4xf32>
    %6 = tpu.iota {dimensions = array<i32: 0>} : vector<8x1xi32>
    %c8_i32 = arith.constant 8 : i32
    %7 = arith.muli %arg0, %c8_i32 : i32
    %8 = vector.broadcast %7 : i32 to vector<8x1xi32>
    %9 = arith.addi %6, %8 : vector<8x1xi32>
    %c8_i32_6 = arith.constant 8 : i32
    %10 = vector.broadcast %c8_i32_6 : i32 to vector<8x1xi32>
    %11 = arith.cmpi slt, %9, %10 : vector<8x1xi32>
    %cst = arith.constant dense<0xFF800000> : vector<8xf32>
    %12 = vector.multi_reduction <maximumf>, %3, %cst [1] : vector<8x4xf32> to vector<8xf32>
    %13 = vector.shape_cast %12 : vector<8xf32> to vector<8x1xf32>
    %14 = vector.broadcast %13 : vector<8x1xf32> to vector<8x4xf32>
    %15 = arith.subf %3, %14 : vector<8x4xf32>
    %16 = math.exp %15 : vector<8x4xf32>
    %cst_7 = arith.constant dense<0.000000e+00> : vector<8xf32>
    %17 = vector.multi_reduction <add>, %16, %cst_7 [1] : vector<8x4xf32> to vector<8xf32>
    %18 = vector.shape_cast %17 : vector<8xf32> to vector<8x1xf32>
    %19 = math.log %18 : vector<8x1xf32>
    %20 = arith.addf %19, %13 : vector<8x1xf32>
    %21 = tpu.iota {dimensions = array<i32: 1>} : vector<8x4xi32>
    %22 = vector.broadcast %4 : vector<8x1xi32> to vector<8x4xi32>
    %23 = arith.cmpi eq, %21, %22 : vector<8x4xi32>
    %cst_8 = arith.constant 0.000000e+00 : f32
    %24 = vector.broadcast %cst_8 : f32 to vector<8x4xf32>
    %25 = arith.select %23, %3, %24 : vector<8x4xi1>, vector<8x4xf32>
    %cst_9 = arith.constant dense<0.000000e+00> : vector<8xf32>
    %26 = vector.multi_reduction <add>, %25, %cst_9 [1] : vector<8x4xf32> to vector<8xf32>
    %27 = vector.shape_cast %26 : vector<8xf32> to vector<8x1xf32>
    %cst_10 = arith.constant 0.000000e+00 : f32
    %28 = vector.shape_cast %5 : vector<1x4xf32> to vector<1x4xf32>
    %29 = vector.broadcast %28 : vector<1x4xf32> to vector<8x4xf32>
    %30 = vector.broadcast %cst_10 : f32 to vector<8x4xf32>
    %31 = arith.select %23, %29, %30 : vector<8x4xi1>, vector<8x4xf32>
    %cst_11 = arith.constant dense<0.000000e+00> : vector<8xf32>
    %32 = vector.multi_reduction <add>, %31, %cst_11 [1] : vector<8x4xf32> to vector<8xf32>
    %33 = vector.shape_cast %32 : vector<8xf32> to vector<8x1xf32>
    %34 = arith.subf %20, %27 : vector<8x1xf32>
    %35 = arith.mulf %33, %34 : vector<8x1xf32>
    %cst_12 = arith.constant 0.000000e+00 : f32
    %36 = vector.broadcast %cst_12 : f32 to vector<8x1xf32>
    %37 = arith.select %11, %35, %36 : vector<8x1xi1>, vector<8x1xf32>
    %cst_13 = arith.constant 0.000000e+00 : f32
    %38 = vector.broadcast %cst_13 : f32 to vector<8x1xf32>
    %39 = arith.select %11, %33, %38 : vector<8x1xi1>, vector<8x1xf32>
    %c0_14 = arith.constant 0 : index
    %40 = memref.load %arg5[%c0_14] : memref<2xf32, #tpu.memory_space<smem>>
    %41 = vector.shape_cast %37 : vector<8x1xf32> to vector<1x8x1xf32>
    %cst_15 = arith.constant dense<0.000000e+00> : vector<1xf32>
    %42 = vector.multi_reduction <add>, %41, %cst_15 [1, 2] : vector<1x8x1xf32> to vector<1xf32>
    %43 = vector.shape_cast %42 : vector<1xf32> to vector<1x1x1xf32>
    %44 = vector.extract %43[0, 0, 0] : f32 from vector<1x1x1xf32>
    %45 = arith.addf %40, %44 : f32
    %c0_16 = arith.constant 0 : index
    %46 = memref.load %arg5[%c0_16] : memref<2xf32, #tpu.memory_space<smem>>
    memref.store %45, %arg5[%c0_16] : memref<2xf32, #tpu.memory_space<smem>>
    %c1 = arith.constant 1 : index
    %47 = memref.load %arg5[%c1] : memref<2xf32, #tpu.memory_space<smem>>
    %48 = vector.shape_cast %39 : vector<8x1xf32> to vector<1x8x1xf32>
    %cst_17 = arith.constant dense<0.000000e+00> : vector<1xf32>
    %49 = vector.multi_reduction <add>, %48, %cst_17 [1, 2] : vector<1x8x1xf32> to vector<1xf32>
    %50 = vector.shape_cast %49 : vector<1xf32> to vector<1x1x1xf32>
    %51 = vector.extract %50[0, 0, 0] : f32 from vector<1x1x1xf32>
    %52 = arith.addf %47, %51 : f32
    %c1_18 = arith.constant 1 : index
    %53 = memref.load %arg5[%c1_18] : memref<2xf32, #tpu.memory_space<smem>>
    memref.store %52, %arg5[%c1_18] : memref<2xf32, #tpu.memory_space<smem>>
    %c0_i32_19 = arith.constant 0 : i32
    %54 = arith.cmpi eq, %arg0, %c0_i32_19 : i32
    %55 = arith.extui %54 : i1 to i32
    %c0_i32_20 = arith.constant 0 : i32
    %56 = arith.cmpi ne, %55, %c0_i32_20 : i32
    scf.if %56 {
      %c0_21 = arith.constant 0 : index
      %57 = memref.load %arg5[%c0_21] : memref<2xf32, #tpu.memory_space<smem>>
      %c1_22 = arith.constant 1 : index
      %58 = memref.load %arg5[%c1_22] : memref<2xf32, #tpu.memory_space<smem>>
      %59 = arith.divf %57, %58 : f32
      %c0_23 = arith.constant 0 : index
      %c0_24 = arith.constant 0 : index
      %60 = memref.load %arg4[%c0_23, %c0_24] : memref<1x1xf32, #tpu.memory_space<smem>>
      memref.store %59, %arg4[%c0_23, %c0_24] : memref<1x1xf32, #tpu.memory_space<smem>>
    } else {
    }
    return
  }
  func.func @transform_0(%arg0: i32) -> (i32, i32) {
    %c0_i32 = arith.constant 0 : i32
    %c0_i32_0 = arith.constant 0 : i32
    return %arg0, %c0_i32 : i32, i32
  }
  func.func @transform_1(%arg0: i32) -> (i32, i32) {
    %c0_i32 = arith.constant 0 : i32
    %c0_i32_0 = arith.constant 0 : i32
    return %arg0, %c0_i32 : i32, i32
  }
  func.func @transform_2(%arg0: i32) -> (i32, i32) {
    %c0_i32 = arith.constant 0 : i32
    %c0_i32_0 = arith.constant 0 : i32
    %c0_i32_1 = arith.constant 0 : i32
    return %c0_i32, %c0_i32_0 : i32, i32
  }
  func.func @transform_3(%arg0: i32) -> (i32, i32) {
    %c0_i32 = arith.constant 0 : i32
    %c0_i32_0 = arith.constant 0 : i32
    %c0_i32_1 = arith.constant 0 : i32
    return %c0_i32, %c0_i32_0 : i32, i32
  }
}

</mosaic_0001>

<bundles_post_ra>
// kernel: tpu_custom_call.1
= control target key start
LH: loop header
LB: loop body
LE: loop exit
PB: predicated region body
PF: predicated region fallthrough
CT: control target
= control target key end

     0   :  { %vm32_vm0 = vcmask 31744   ;;  %s188_s0 = inlined_call_operand.vmem [shape: f32[8,4], index: 0, kind: input, shape index: {}]   ;;  %s189_s1 = inlined_call_operand.vmem [shape: s32[8,1], index: 1, kind: input, shape index: {}]   ;;  %s190_s2 = inlined_call_operand.vmem [shape: f32[1,4], index: 2, kind: input, shape index: {}]   ;;  %s191_s3 = inlined_call_operand.hbm [shape: f32[1,1], index: 3, kind: output, shape index: {}]  }
   0x1   :  { %v23_v0 = vld [vmem:[%s188_s0] sm:$0xff] }
   0x2   :  { %8 = vsyncpa [#allocation4], 0  ;;  %v33_v1 = vsel %vm32_vm0, %v23_v0, -inf  ;;  %v150_v2 = vmov 0   ;;  %v24_v3 = vld [vmem:[%s189_s1] sm:$0xff]  ;;  %v45_v7 = vlaneseq  ;;  %vm70_vm2 = vcmask 7168  }
   0x3   :  { %133 = vset.pattern.permute.xlu0 %v150_v2  ;;  %v122_v13 = vld [vmem:[%s190_s2] ss:$0 sm:$0xff]  ;;  %s151_s19 = smov [#allocation3]  }
   0x4   :  { %34 = vmax.xlane.f32.xlu0 %v33_v1  ;;  %v46_v8 = vand.u32 127, %v45_v7 }
  0x1a   :  { %48 = vperm.xlu0 %133, %v24_v3  }
  0x8d   :  { %v35_v4 = vpop.xlane.xlu0 %34 }
  0x8e   :  { %v36_v5 = vsub.f32 %v23_v0, %v35_v4 }
  0x90   :  { %v37_v6 = vmul.f32 1.442695, %v36_v5 }
  0x92   :  { %134 = vpow2.f32 %v37_v6 }
  0x95   :  { %v49_v9 = vpop.permute.xlu0 %48 }
  0x96   :  { %vm50_vm1 = vcmp.eq.s32.totalorder %v46_v8, %v49_v9 }
  0x97   :  { %v51_v11 = vsel %vm50_vm1, %v23_v0, 0.0  ;;  %v61_v15 = vsel %vm50_vm1, %v122_v13, 0.0 }
  0x98   :  { %v52_v14 = vsel %vm32_vm0, %v51_v11, 0.0  ;;  %v62_v16 = vsel %vm32_vm0, %v61_v15, 0.0 }
  0x9f   :  { %v135_v10 = vpop.eup %134 }
  0xa0   :  { %v39_v12 = vsel %vm32_vm0, %v135_v10, 0.0 }
  0xa1   :  { %40 = vadd.xlane.f32.xlu1 %v39_v12 }
  0xa5   :  { %53 = vadd.xlane.f32.xlu1 %v52_v14 }
  0xa9   :  { %63 = vadd.xlane.f32.xlu1 %v62_v16 }
 0x12a   :  { %v41_v17 = vpop.xlane.xlu1 %40 }
 0x12b   :  { %136 = vlog2.f32 %v41_v17 }
 0x12e   :  { %v54_v19 = vpop.xlane.xlu1 %53 }
 0x132   :  { %v64_v23 = vpop.xlane.xlu1 %63 }
 0x133   :  { %v85_v26 = vsel %vm70_vm2, %v64_v23, 0.0 }
 0x138   :  { %v137_v18 = vpop.eup %136 }
 0x139   :  { %v43_v20 = vmul.f32 0.6931472, %v137_v18 }
 0x13b   :  { %v44_v21 = vadd.f32 %v43_v20, %v35_v4 }
 0x13d   :  { %v65_v22 = vsub.f32 %v44_v21, %v54_v19 }
 0x13f   :  { %v66_v24 = vmul.f32 %v65_v22, %v64_v23 }
 0x141   :  { %v71_v25 = vsel %vm70_vm2, %v66_v24, 0.0 }
 0x142   :  { %72 = vadd.xlane.f32.xlu1 %v71_v25 }
 0x146   :  { %86 = vadd.xlane.f32.xlu1 %v85_v26 }
 0x1cb   :  { %v73_v27 = vpop.xlane.xlu1 %72 }
 0x1cc   :  { %v74_v28 = vrot.slane %v73_v27, 4 }
 0x1ce   :  { %v75_v29 = vadd.f32 %v74_v28, %v73_v27 }
 0x1cf   :  { %v87_v30 = vpop.xlane.xlu1 %86 }
 0x1d0   :  { %v76_v31 = vrot.slane %v75_v29, 2  ;;  %v88_v32 = vrot.slane %v87_v30, 4 }
 0x1d2   :  { %v89_v33 = vadd.f32 %v88_v32, %v87_v30  ;;  %v77_v34 = vadd.f32 %v76_v31, %v75_v29 }
 0x1d4   :  { %v90_v35 = vrot.slane %v89_v33, 2  ;;  %v78_v36 = vrot.slane %v77_v34, 1 }
 0x1d6   :  { %v91_v37 = vadd.f32 %v90_v35, %v89_v33  ;;  %v79_v38 = vadd.f32 %v78_v36, %v77_v34 }
 0x1d8   :  { %125 = vpush %v79_v38  ;;  %v92_v39 = vrot.slane %v91_v37, 1 }
 0x1da   :  { %v93_v40 = vadd.f32 %v92_v39, %v91_v37 }
 0x1dc   :  { %127 = vpush %v93_v40 }
 0x209   :  { %s126_s1 = spop %125 }
 0x20d   :  { %s128_s2 = spop %127 }
 0x20e   :  { %v103_v41 = vstv %s128_s2 }
 0x20f   :  { %138 = vrcp.f32 %v103_v41 }
 0x21c   :  { %v139_v42 = vpop.eup %138 }
 0x21d   :  { %129 = vpush %v139_v42 }
 0x24e   :  { %s130_s17 = spop %129 }
 0x24f   :  { %s106_s18 = smul.f32 %s130_s17, %s126_s1 }
 0x251   :  { %108 = sst [smem:[#allocation3]] %s106_s18 }
 0x252   :  { %116 = dma.smem_to_hbm %s151_s19, 16, %s191_s3, [#allocation4]  }
 0x253   :  { %148 = dma.done.wait [#allocation4], 16  }
 0x254   :  { %149 = vsyncadd [#allocation4], 4294967280 }
 0x255   :  { %120 = sfence }
 0x256   :  { %121 = vsyncpa [#allocation4], 1 }

</bundles_post_ra>
